<compile_context>
chip_gen: v5e
topology: v5e:2x2
jax: 0.10.0
libtpu: 0.0.40
codegen_flags: <defaults>
</compile_context>

<pallas_src>
import functools

import jax
import jax.numpy as jnp
from jax.experimental import pallas as pl
from jax.experimental.pallas import tpu as pltpu


def _round_up(n: int, m: int) -> int:
    return ((n + m - 1) // m) * m


def _dqn_kernel(x_ref, w1_ref, b1_ref, w2_ref, b2_ref, w3_ref, b3_ref, out_ref):
    """One batch tile: three MXU matmuls + f32 bias/ReLU. Weights resident in VMEM."""
    mm = w1_ref.dtype

    x = x_ref[...].astype(mm)                                        # (bt, d_in)

    # fc1 + ReLU (f32 accumulate / elementwise)
    h1 = jnp.dot(x, w1_ref[...], preferred_element_type=jnp.float32) + b1_ref[...]
    h1 = jnp.maximum(h1, 0.0)

    # fc2 + ReLU
    h2 = jnp.dot(h1.astype(mm), w2_ref[...],
                 preferred_element_type=jnp.float32) + b2_ref[...]
    h2 = jnp.maximum(h2, 0.0)

    # fc3 (no activation)
    out = jnp.dot(h2.astype(mm), w3_ref[...],
                  preferred_element_type=jnp.float32) + b3_ref[...]
    out_ref[...] = out.astype(out_ref.dtype)


def prepare_dqn_params(w1, b1, w2, b2, w3, b3, matmul_dtype=jnp.bfloat16):
    """Hoisted one-time weight prep: cast weights to the MXU dtype, biases to
    f32 rows of shape (1, out).  Call once and reuse across forward passes."""
    def bias_row(b):
        return jnp.asarray(b, jnp.float32).reshape(1, -1)
    return (jnp.asarray(w1, matmul_dtype), bias_row(b1),
            jnp.asarray(w2, matmul_dtype), bias_row(b2),
            jnp.asarray(w3, matmul_dtype), bias_row(b3))


def _pick_batch_tile(batch: int, block_b: int) -> int:
    """Single step for tiny acting batches; >=2 sublane-legal steps otherwise."""
    sub = 8                                  # f32 x/out blocks -> sublane multiple of 8
    if batch <= 64:                          # acting-sized batch: one grid step
        return batch                         # full batch dim is always a legal block
    bt = _round_up(-(-batch // 2), sub)      # ceil(B/2) -> >=2 steps (v7x megacore)
    return min(bt, max(sub, _round_up(block_b, sub)))


@functools.partial(jax.jit, static_argnames=("block_b",))
def dqn_forward(x, params, *, block_b: int = 2048):
    """x: (B, input_dims) f32.  params: output of prepare_dqn_params."""
    w1, b1, w2, b2, w3, b3 = params
    B, d_in = x.shape
    h1_dim, h2_dim, n_act = w1.shape[1], w2.shape[1], w3.shape[1]
    assert w1.shape[0] == d_in and w2.shape[0] == h1_dim and w3.shape[0] == h2_dim

    bt = _pick_batch_tile(B, block_b)
    grid = (pl.cdiv(B, bt),)

    resident = lambda a: pl.BlockSpec(a.shape, lambda i: (0, 0))

    flops = 2 * B * (d_in * h1_dim + h1_dim * h2_dim + h2_dim * n_act)
    bytes_accessed = (x.size * x.dtype.itemsize
                      + sum(int(a.size) * a.dtype.itemsize for a in params)
                      + B * n_act * 4)

    return pl.pallas_call(
        _dqn_kernel,
        out_shape=jax.ShapeDtypeStruct((B, n_act), jnp.float32),
        grid=grid,
        in_specs=[
            pl.BlockSpec((bt, d_in), lambda i: (i, 0)),     # x: batch-tiled, unpadded
            resident(w1), resident(b1),                     # weights/biases resident
            resident(w2), resident(b2),
            resident(w3), resident(b3),
        ],
        out_specs=pl.BlockSpec((bt, n_act), lambda i: (i, 0)),   # lane = full n_act
        compiler_params=pltpu.CompilerParams(
            dimension_semantics=("parallel",),              # megacore split on v7x
        ),
        cost_estimate=pl.CostEstimate(flops=flops, transcendentals=0,
                                      bytes_accessed=bytes_accessed),
    )(x, w1, b1, w2, b2, w3, b3)


def init_linear_params(key, in_features, out_features):
    """PyTorch nn.Linear default init: U(-1/sqrt(fan_in), 1/sqrt(fan_in))."""
    kw, kb = jax.random.split(key)
    bound = 1.0 / jnp.sqrt(jnp.float32(in_features))
    w = jax.random.uniform(kw, (in_features, out_features), jnp.float32, -bound, bound)
    b = jax.random.uniform(kb, (out_features,), jnp.float32, -bound, bound)
    return w, b


def reference_forward(x, w1, b1, w2, b2, w3, b3, mm_dtype=jnp.float32):
    """Pure-JAX reference. mm_dtype=bfloat16 mirrors the kernel's MXU operands."""
    def dot(a, b):
        return jnp.dot(a.astype(mm_dtype), b.astype(mm_dtype),
                       preferred_element_type=jnp.float32)
    h1 = jnp.maximum(dot(x, w1) + b1.reshape(1, -1), 0.0)
    h2 = jnp.maximum(dot(h1, w2) + b2.reshape(1, -1), 0.0)
    return dot(h2, w3) + b3.reshape(1, -1)


if __name__ == "__main__":
    # DeepQNetwork(lr, input_dims, fc1_dims, fc2_dims, n_actions) -- small shapes.
    # NOTE: optimizer (Adam) / MSELoss / .to(device) are training-side and not part
    # of the forward pass implemented here.
    input_dims, fc1_dims, fc2_dims, n_actions = 16, 32, 32, 4

    key = jax.random.PRNGKey(0)
    kx1, kx2, k1, k2, k3 = jax.random.split(key, 5)

    w1, b1 = init_linear_params(k1, input_dims, fc1_dims)
    w2, b2 = init_linear_params(k2, fc1_dims, fc2_dims)
    w3, b3 = init_linear_params(k3, fc2_dims, n_actions)

    # Weight prep hoisted out of the per-call path (bf16 MXU operands).
    params_bf16 = prepare_dqn_params(w1, b1, w2, b2, w3, b3, matmul_dtype=jnp.bfloat16)

    # Case 1: tiny acting batch (single grid step).
    x_small = jax.random.normal(kx1, (8, input_dims), dtype=jnp.float32)
    # Case 2: replay-buffer-style batch -> two parallel grid steps (v7x megacore).
    x_big = jax.random.normal(kx2, (400, input_dims), dtype=jnp.float32)

    for x in (x_small, x_big):
        out = jax.block_until_ready(dqn_forward(x, params_bf16))
        assert out.shape == (x.shape[0], n_actions)

        # Exact-path check vs. a reference using the same bf16 MXU operands.
        ref_mm = reference_forward(x, w1, b1, w2, b2, w3, b3, mm_dtype=jnp.bfloat16)
        assert jnp.allclose(out, ref_mm, atol=1e-4, rtol=1e-4), \
            "mismatch vs bf16-matmul reference"

        # Sanity check vs. the full-f32 PyTorch-equivalent forward.
        ref_f32 = reference_forward(x, w1, b1, w2, b2, w3, b3, mm_dtype=jnp.float32)
        assert jnp.allclose(out, ref_f32, atol=1e-1, rtol=1e-1), \
            "mismatch vs f32 reference"

    # Optional exact-f32 path (nn.Linear-exact math) via the matmul_dtype knob.
    params_f32 = prepare_dqn_params(w1, b1, w2, b2, w3, b3, matmul_dtype=jnp.float32)
    out_f32 = jax.block_until_ready(dqn_forward(x_big, params_f32))
    ref_f32 = reference_forward(x_big, w1, b1, w2, b2, w3, b3, mm_dtype=jnp.float32)
    assert jnp.allclose(out_f32, ref_f32, atol=1e-4, rtol=1e-4), \
        "mismatch on f32 matmul path"

    print("KERNEL_OK")
</pallas_src>

<mosaic_0001>
module attributes {stable_mosaic.version = 11 : i64} {
  func.func @_dqn_kernel(%arg0: i32, %arg1: memref<8x16xf32, #tpu.memory_space<vmem>>, %arg2: memref<16x32xbf16, #tpu.memory_space<vmem>>, %arg3: memref<1x32xf32, #tpu.memory_space<vmem>>, %arg4: memref<32x32xbf16, #tpu.memory_space<vmem>>, %arg5: memref<1x32xf32, #tpu.memory_space<vmem>>, %arg6: memref<32x4xbf16, #tpu.memory_space<vmem>>, %arg7: memref<1x4xf32, #tpu.memory_space<vmem>>, %arg8: memref<8x4xf32, #tpu.memory_space<vmem>>) attributes {dimension_semantics = [#tpu.dimension_semantics<parallel>], iteration_bounds = array<i64: 1>, scalar_prefetch = 0 : i64, scratch_operands = 0 : i64, tpu.core_type = #tpu.core_type<tc>, window_params = [{transform_indices = @transform_0, window_bounds = array<i64: 8, 16>}, {pipeline_mode = #tpu.pipeline_mode<synchronous>, transform_indices = @transform_1, window_bounds = array<i64: 16, 32>}, {pipeline_mode = #tpu.pipeline_mode<synchronous>, transform_indices = @transform_2, window_bounds = array<i64: 1, 32>}, {pipeline_mode = #tpu.pipeline_mode<synchronous>, transform_indices = @transform_3, window_bounds = array<i64: 32, 32>}, {pipeline_mode = #tpu.pipeline_mode<synchronous>, transform_indices = @transform_4, window_bounds = array<i64: 1, 32>}, {pipeline_mode = #tpu.pipeline_mode<synchronous>, transform_indices = @transform_5, window_bounds = array<i64: 32, 4>}, {pipeline_mode = #tpu.pipeline_mode<synchronous>, transform_indices = @transform_6, window_bounds = array<i64: 1, 4>}, {transform_indices = @transform_7, window_bounds = array<i64: 8, 4>}]} {
    %c0 = arith.constant 0 : index
    %c0_0 = arith.constant 0 : index
    %0 = vector.load %arg1[%c0, %c0_0] : memref<8x16xf32, #tpu.memory_space<vmem>>, vector<8x16xf32>
    %1 = arith.truncf %0 : vector<8x16xf32> to vector<8x16xbf16>
    %c0_1 = arith.constant 0 : index
    %c0_2 = arith.constant 0 : index
    %2 = vector.load %arg2[%c0_1, %c0_2] : memref<16x32xbf16, #tpu.memory_space<vmem>>, vector<16x32xbf16>
    %cst = arith.constant dense<0.000000e+00> : vector<8x32xf32>
    %3 = tpu.matmul %1, %2, %cst {dimension_numbers = #tpu.dot_dimension_numbers<[1], [0], [0], [1], [0, 0, 1, 1], [], []>} : vector<8x16xbf16>, vector<16x32xbf16>, vector<8x32xf32> -> vector<8x32xf32>
    %c0_3 = arith.constant 0 : index
    %c0_4 = arith.constant 0 : index
    %4 = vector.load %arg3[%c0_3, %c0_4] : memref<1x32xf32, #tpu.memory_space<vmem>>, vector<1x32xf32>
    %5 = vector.broadcast %4 : vector<1x32xf32> to vector<8x32xf32>
    %6 = arith.addf %3, %5 : vector<8x32xf32>
    %cst_5 = arith.constant 0.000000e+00 : f32
    %7 = vector.broadcast %cst_5 : f32 to vector<8x32xf32>
    %8 = arith.maximumf %6, %7 : vector<8x32xf32>
    %9 = arith.truncf %8 : vector<8x32xf32> to vector<8x32xbf16>
    %c0_6 = arith.constant 0 : index
    %c0_7 = arith.constant 0 : index
    %10 = vector.load %arg4[%c0_6, %c0_7] : memref<32x32xbf16, #tpu.memory_space<vmem>>, vector<32x32xbf16>
    %cst_8 = arith.constant dense<0.000000e+00> : vector<8x32xf32>
    %11 = tpu.matmul %9, %10, %cst_8 {dimension_numbers = #tpu.dot_dimension_numbers<[1], [0], [0], [1], [0, 0, 1, 1], [], []>} : vector<8x32xbf16>, vector<32x32xbf16>, vector<8x32xf32> -> vector<8x32xf32>
    %c0_9 = arith.constant 0 : index
    %c0_10 = arith.constant 0 : index
    %12 = vector.load %arg5[%c0_9, %c0_10] : memref<1x32xf32, #tpu.memory_space<vmem>>, vector<1x32xf32>
    %13 = vector.broadcast %12 : vector<1x32xf32> to vector<8x32xf32>
    %14 = arith.addf %11, %13 : vector<8x32xf32>
    %cst_11 = arith.constant 0.000000e+00 : f32
    %15 = vector.broadcast %cst_11 : f32 to vector<8x32xf32>
    %16 = arith.maximumf %14, %15 : vector<8x32xf32>
    %17 = arith.truncf %16 : vector<8x32xf32> to vector<8x32xbf16>
    %c0_12 = arith.constant 0 : index
    %c0_13 = arith.constant 0 : index
    %18 = vector.load %arg6[%c0_12, %c0_13] : memref<32x4xbf16, #tpu.memory_space<vmem>>, vector<32x4xbf16>
    %cst_14 = arith.constant dense<0.000000e+00> : vector<8x4xf32>
    %19 = tpu.matmul %17, %18, %cst_14 {dimension_numbers = #tpu.dot_dimension_numbers<[1], [0], [0], [1], [0, 0, 1, 1], [], []>} : vector<8x32xbf16>, vector<32x4xbf16>, vector<8x4xf32> -> vector<8x4xf32>
    %c0_15 = arith.constant 0 : index
    %c0_16 = arith.constant 0 : index
    %20 = vector.load %arg7[%c0_15, %c0_16] : memref<1x4xf32, #tpu.memory_space<vmem>>, vector<1x4xf32>
    %21 = vector.broadcast %20 : vector<1x4xf32> to vector<8x4xf32>
    %22 = arith.addf %19, %21 : vector<8x4xf32>
    %c0_17 = arith.constant 0 : index
    %c0_18 = arith.constant 0 : index
    %23 = vector.load %arg8[%c0_17, %c0_18] : memref<8x4xf32, #tpu.memory_space<vmem>>, vector<8x4xf32>
    tpu.vector_store %arg8[%c0_17, %c0_18], %22 {strides = array<i32>} : memref<8x4xf32, #tpu.memory_space<vmem>>, vector<8x4xf32>,
    return
  }
  func.func @transform_0(%arg0: i32) -> (i32, i32) {
    %c0_i32 = arith.constant 0 : i32
    %c0_i32_0 = arith.constant 0 : i32
    return %arg0, %c0_i32 : i32, i32
  }
  func.func @transform_1(%arg0: i32) -> (i32, i32) {
    %c0_i32 = arith.constant 0 : i32
    %c0_i32_0 = arith.constant 0 : i32
    %c0_i32_1 = arith.constant 0 : i32
    return %c0_i32, %c0_i32_0 : i32, i32
  }
  func.func @transform_2(%arg0: i32) -> (i32, i32) {
    %c0_i32 = arith.constant 0 : i32
    %c0_i32_0 = arith.constant 0 : i32
    %c0_i32_1 = arith.constant 0 : i32
    return %c0_i32, %c0_i32_0 : i32, i32
  }
  func.func @transform_3(%arg0: i32) -> (i32, i32) {
    %c0_i32 = arith.constant 0 : i32
    %c0_i32_0 = arith.constant 0 : i32
    %c0_i32_1 = arith.constant 0 : i32
    return %c0_i32, %c0_i32_0 : i32, i32
  }
  func.func @transform_4(%arg0: i32) -> (i32, i32) {
    %c0_i32 = arith.constant 0 : i32
    %c0_i32_0 = arith.constant 0 : i32
    %c0_i32_1 = arith.constant 0 : i32
    return %c0_i32, %c0_i32_0 : i32, i32
  }
  func.func @transform_5(%arg0: i32) -> (i32, i32) {
    %c0_i32 = arith.constant 0 : i32
    %c0_i32_0 = arith.constant 0 : i32
    %c0_i32_1 = arith.constant 0 : i32
    return %c0_i32, %c0_i32_0 : i32, i32
  }
  func.func @transform_6(%arg0: i32) -> (i32, i32) {
    %c0_i32 = arith.constant 0 : i32
    %c0_i32_0 = arith.constant 0 : i32
    %c0_i32_1 = arith.constant 0 : i32
    return %c0_i32, %c0_i32_0 : i32, i32
  }
  func.func @transform_7(%arg0: i32) -> (i32, i32) {
    %c0_i32 = arith.constant 0 : i32
    %c0_i32_0 = arith.constant 0 : i32
    return %arg0, %c0_i32 : i32, i32
  }
}

</mosaic_0001>

<bundles_post_ra>
// kernel: dqn_forward.1
= control target key start
LH: loop header
LB: loop body
LE: loop exit
PB: predicated region body
PF: predicated region fallthrough
CT: control target
= control target key end

     0   :  { %12 = vsyncpa [#allocation3], 0  ;;  %s334_s0 = inlined_call_operand.hbm [shape: f32[8,16], index: 0, kind: input, shape index: {}]   ;;  %s335_s1 = inlined_call_operand.hbm [shape: bf16[16,32], index: 1, kind: input, shape index: {}]   ;;  %s336_s2 = inlined_call_operand.vmem [shape: f32[1,32], index: 2, kind: input, shape index: {}]   ;;  %s337_s3 = inlined_call_operand.vmem [shape: bf16[32,32], index: 3, kind: input, shape index: {}]   ;;  %s338_s4 = inlined_call_operand.vmem [shape: f32[1,32], index: 4, kind: input, shape index: {}]   ;;  %s339_s5 = inlined_call_operand.vmem [shape: bf16[32,4], index: 5, kind: input, shape index: {}]   ;;  %s340_s6 = inlined_call_operand.vmem [shape: f32[1,4], index: 6, kind: input, shape index: {}]   ;;  %s341_s7 = inlined_call_operand.vmem [shape: f32[8,4], index: 7, kind: output, shape index: {}]  }
   0x1   :  { %s19_s26 = sshll.u32 %s334_s0, 4  ;;  %s20_s26 = int_to_ptr.hbm [resolvable:$true] %s19_s26 }
   0x2   :  { %13 = vsyncpa [#allocation5], 0  ;;  %s260_s27 = smov [#allocation2]   ;;  %s29_s8 = sshll.u32 %s335_s1, 4  ;;  %s30_s8 = int_to_ptr.hbm [resolvable:$true] %s29_s8 }
   0x3   :  { %s21_s28 = sshll.u32 %s260_s27, 4  ;;  %s261_s9 = smov [#allocation4]   ;;  %s22_s28 = int_to_ptr.vmem [resolvable:$true] %s21_s28 }
   0x4   :  { %24 = dma.hbm_to_vmem [thread:$0]  %s20_s26, 128, %s22_s28, [#allocation3]  }
   0x5   :  { %s31_s10 = sshll.u32 %s261_s9, 4  ;;  %s262_s11 = smov 64   ;;  %s32_s10 = int_to_ptr.vmem [resolvable:$true] %s31_s10 }
   0x6   :  { %s263_s12 = smov 4  }
   0x7   :  { %37 = dma.hbm_to_vmem [thread:$0]  %s30_s8, 128, %s32_s10, [#allocation5], %s262_s11, %s262_s11, %s263_s12  }
   0x8   :  { %256 = dma.done.wait [#allocation3], 128  }
   0x9   :  { %257 = vsyncadd [#allocation3], 4294967168 }
   0xa   :  { %258 = dma.done.wait [#allocation5], 128  }
   0xb   :  { %259 = vsyncadd [#allocation5], 4294967168  ;;  %v196_v0 = vld [vmem:[#allocation4] sm:$0xff]  ;;  %v57_v1 = vld [vmem:[#allocation2] sm:$0xff]  ;;  %vm71_vm0 = vcmask 130048   ;;  %vm110_vm1 = vcmask 261120  }
   0xc   :  { %v58_v2 = vpack.c.bf16 %v57_v1, %v57_v1  ;;  %82 = vmatpush.bf16.msra.mxu0 %v196_v0  ;;  %v198_v3 = vld [vmem:[%s337_s3 + $0x8] sm:$0xff]  ;;  %v197_v4 = vld [vmem:[%s337_s3] sm:$0xff]  ;;  %vm165_vm2 = vcmask 31744  }
   0xd   :  { %120 = vmatpush.bf16.msra.mxu1 %v198_v3  ;;  %v205_v5 = vld [vmem:[%s336_s2] ss:$0 sm:$0xff]  ;;  %v200_v11 = vld [vmem:[%s339_s5 + $0x8] sm:$0xff] }
   0xe   :  { %158 = vmatpush.bf16.msra.mxu2 %v200_v11  ;;  %v199_v12 = vld [vmem:[%s339_s5] sm:$0xff] }
   0xf   :  { %177 = vmatmul.msk.bf16.vlgmr.msra.gmra.mxu0 %vm71_vm0, %v58_v2  ;;  %v206_v13 = vld [vmem:[%s338_s4] ss:$0 sm:$0xff] }
  0x10   :  { %v207_v19 = vld [vmem:[%s340_s6] ss:$0 sm:$0xff] }
  0x11   :  { %121 = vmatpush.bf16.msra.mxu1 %v197_v4 }
  0x12   :  { %159 = vmatpush.bf16.msra.mxu2 %v199_v12 }
  0x8c   :  { %v84_v6 = vpop.f32.mrf.mxu0 }
  0x8d   :  { %v85_v7 = vadd.f32 %v205_v5, %v84_v6 }
  0x8f   :  { %v88_v8 = vmax.f32 %v85_v7, 0.0 }
  0x91   :  { %v89_v9 = vpack.c.bf16 %v88_v8, %v88_v8 }
  0x93   :  { %186 = vmatmul.msk.bf16.vlgmr.msra.gmra.mxu1 %vm110_vm1, %v89_v9 }
  0x94   :  { %v86_v10 = vpop.f32.mrf.mxu0 }
 0x110   :  { %v123_v14 = vpop.f32.mrf.mxu1 }
 0x111   :  { %v124_v15 = vadd.f32 %v206_v13, %v123_v14 }
 0x113   :  { %v127_v16 = vmax.f32 %v124_v15, 0.0 }
 0x115   :  { %v128_v17 = vpack.c.bf16 %v127_v16, %v127_v16 }
 0x117   :  { %195 = vmatmul.msk.bf16.vlgmr.msra.gmra.mxu2 %vm110_vm1, %v128_v17 }
 0x118   :  { %v125_v18 = vpop.f32.mrf.mxu1 }
 0x19a   :  { %v161_v20 = vpop.f32.mrf.mxu2 }
 0x19b   :  { %v162_v21 = vadd.f32 %v207_v19, %v161_v20 }
 0x19d   :  { %166 = vst.msk [vmem:[%s341_s7] sm:$0xff] %vm165_vm2, %v162_v21 }
 0x1a2   :  { %v163_v22 = vpop.f32.mrf.mxu2 }
 0x1a3   :  { %171 = vsyncpa [#allocation3], 1 }
 0x1a4   :  { %172 = vsyncpa [#allocation5], 1 }

</bundles_post_ra>
